<compile_context>
chip_gen: v7x
topology: tpu7x:2x2x1
jax: 0.10.0
libtpu: 0.0.40
codegen_flags: <defaults>
</compile_context>

<pallas_src>
import functools

import jax
import jax.numpy as jnp
from jax.experimental import pallas as pl
from jax.experimental.pallas import tpu as pltpu

NUM_EXPERTS = 4
ROUTER_PAD = 128  # lane-dense width for the router logits


def _round_up(n, m):
    return -(-n // m) * m


@functools.lru_cache(maxsize=1)
def _vmem_budget_bytes():
    """~80% of physical VMEM (generation-aware), with a safe fallback."""
    try:
        cap = int(pltpu.get_tpu_info().vmem_capacity_bytes)
    except Exception:
        cap = 64 * 1024 * 1024
    return int(0.8 * cap)


# ----------------------------------------------------------------------------
# kernels
# ----------------------------------------------------------------------------
def _route_weights(x_bf, rw1_ref, rb1_ref, rw2_ref, rb2_ref):
    """Router MLP + exact softmax over the lane-dense padded logits."""
    h = jnp.maximum(
        jnp.dot(x_bf, rw1_ref[...], preferred_element_type=jnp.float32)
        + rb1_ref[...], 0.0)                                   # (BM, hid) f32
    logits = (jnp.dot(h.astype(rw2_ref.dtype), rw2_ref[...],
                      preferred_element_type=jnp.float32)
              + rb2_ref[...])                                  # (BM, 128) f32
    m = jnp.max(logits, axis=-1, keepdims=True)
    ez = jnp.exp(logits - m)                                   # pad lanes -> 0
    denom = jnp.sum(ez, axis=-1, keepdims=True)
    return ez / denom                                          # exact softmax


def _resident_kernel(x_ref,
                     rw1_ref, rb1_ref, rw2_ref, rb2_ref,
                     ew1_ref, eb1_ref, ew2_ref, eb2_ref,
                     out_ref):
    """All experts VMEM-resident; one batch tile per grid step."""
    x = x_ref[...].astype(jnp.bfloat16)                        # in-kernel cast
    route = _route_weights(x, rw1_ref, rb1_ref, rw2_ref, rb2_ref)

    num_e = ew1_ref.shape[0]
    acc = None
    for e in range(num_e):  # static unroll -> static column slice of `route`
        he = jnp.maximum(
            jnp.dot(x, ew1_ref[e], preferred_element_type=jnp.float32)
            + eb1_ref[e], 0.0)                                 # (BM, 2D) f32
        ye = (jnp.dot(he.astype(ew2_ref.dtype), ew2_ref[e],
                      preferred_element_type=jnp.float32)
              + eb2_ref[e])                                    # (BM, D) f32
        contrib = route[:, e:e + 1] * ye
        acc = contrib if acc is None else acc + contrib
    out_ref[...] = acc.astype(out_ref.dtype)


def _streaming_kernel(x_ref,
                      rw1_ref, rb1_ref, rw2_ref, rb2_ref,
                      ew1_ref, eb1_ref, ew2_ref, eb2_ref,
                      out_ref,
                      route_scratch):
    """One expert's weights per grid step; accumulate directly into out_ref."""
    e = pl.program_id(1)
    x = x_ref[...].astype(jnp.bfloat16)                        # in-kernel cast

    @pl.when(e == 0)
    def _():
        route_scratch[...] = _route_weights(x, rw1_ref, rb1_ref,
                                            rw2_ref, rb2_ref)

    he = jnp.maximum(
        jnp.dot(x, ew1_ref[...], preferred_element_type=jnp.float32)
        + eb1_ref[...], 0.0)                                   # (BM, 2D) f32
    ye = (jnp.dot(he.astype(ew2_ref.dtype), ew2_ref[...],
                  preferred_element_type=jnp.float32)
          + eb2_ref[...])                                      # (BM, D) f32

    # select this expert's routing weight column (dynamic lane select)
    lane = jax.lax.broadcasted_iota(jnp.int32, route_scratch.shape, 1)
    w_e = jnp.sum(jnp.where(lane == e, route_scratch[...], 0.0),
                  axis=-1, keepdims=True)                      # (BM, 1) f32
    contrib = (w_e * ye).astype(out_ref.dtype)

    @pl.when(e == 0)
    def _():
        out_ref[...] = contrib                                 # no zero-fill

    @pl.when(e > 0)
    def _():
        out_ref[...] = out_ref[...] + contrib                  # VMEM-resident


# ----------------------------------------------------------------------------
# wrapper
# ----------------------------------------------------------------------------
@functools.partial(jax.jit, static_argnames=("tile_b", "force_streaming"))
def hierarchical_router(x, params, *, tile_b=1024, force_streaming=False):
    """x: (B, D) float32. params: dict (see init_params)."""
    B, D = x.shape
    hid = D // 2
    E = params["ew1"].shape[0]

    budget = _vmem_budget_bytes()

    # ---- VMEM accounting (conservative: inputs counted double-buffered) ----
    # bytes of VMEM per batch row during one tile's compute:
    #   x f32 (x2) + out f32 (x2) + x bf16 copy + he f32/bf16 + ye f32 + router
    per_row = 38 * D + 6 * hid + 8 * ROUTER_PAD + 512
    router_bytes = 2 * (2 * (D * hid + hid * ROUTER_PAD)
                        + 4 * (hid + ROUTER_PAD))
    expert_bytes_all = 8 * E * D * D + 12 * E * D          # bf16 W, f32 b
    expert_bytes_one = 8 * D * D + 12 * D
    resident_fixed = router_bytes + 2 * expert_bytes_all
    streaming_fixed = router_bytes + 2 * expert_bytes_one

    def _max_bm(fixed):
        avail = budget - fixed
        return 0 if avail <= 0 else avail // per_row

    bm_res = _max_bm(resident_fixed)
    bm_str = _max_bm(streaming_fixed)

    need_bm = min(_round_up(B, 8), 128)
    use_resident = (not force_streaming) and (bm_res >= need_bm)

    bm_cap = bm_res if use_resident else bm_str
    bm_cap = min(tile_b, bm_cap)
    bm_cap = max(8, (bm_cap // 8) * 8)   # clamp; huge-D fallback may spill

    if B <= bm_cap:
        # split into >= 2 tiles when possible so both v7x TCs get work
        bm = min(bm_cap, max(8, _round_up(-(-B // 2), 8)))
    else:
        bm = bm_cap

    pad_b = (-B) % bm
    if pad_b:
        x = jnp.pad(x, ((0, pad_b), (0, 0)))
    Bp = B + pad_b
    n_btiles = Bp // bm

    # ---- weight prep: bf16 weights, lane-dense padded router layer 2 ----
    rw1 = params["rw1"].astype(jnp.bfloat16)                       # (D, hid)
    rb1 = params["rb1"].astype(jnp.float32).reshape(1, hid)        # (1, hid)
    rw2 = jnp.zeros((hid, ROUTER_PAD), jnp.bfloat16).at[:, :E].set(
        params["rw2"].astype(jnp.bfloat16))                        # (hid, 128)
    rb2 = jnp.full((1, ROUTER_PAD), -1e30, jnp.float32).at[:, :E].set(
        params["rb2"].astype(jnp.float32).reshape(1, E))           # (1, 128)
    ew1 = params["ew1"].astype(jnp.bfloat16)                       # (E, D, 2D)
    eb1 = params["eb1"].astype(jnp.float32)                        # (E, 1, 2D)
    ew2 = params["ew2"].astype(jnp.bfloat16)                       # (E, 2D, D)
    eb2 = params["eb2"].astype(jnp.float32)                        # (E, 1, D)

    # ---- cost estimate ----
    flops = (2 * Bp * (D * hid + hid * ROUTER_PAD)
             + 2 * Bp * E * (D * 2 * D + 2 * D * D))
    w_bytes = ((rw1.size + rw2.size + ew1.size + ew2.size) * 2
               + (rb1.size + rb2.size + eb1.size + eb2.size) * 4)
    bytes_acc = Bp * D * 8 + w_bytes * (1 if use_resident else n_btiles)
    cost = pl.CostEstimate(flops=flops, transcendentals=Bp * ROUTER_PAD,
                           bytes_accessed=bytes_acc)

    if use_resident:
        grid_spec = pltpu.PrefetchScalarGridSpec(
            num_scalar_prefetch=0,
            grid=(n_btiles,),
            in_specs=[
                pl.BlockSpec((bm, D), lambda i: (i, 0)),              # x
                pl.BlockSpec((D, hid), lambda i: (0, 0)),             # rw1
                pl.BlockSpec((1, hid), lambda i: (0, 0)),             # rb1
                pl.BlockSpec((hid, ROUTER_PAD), lambda i: (0, 0)),    # rw2
                pl.BlockSpec((1, ROUTER_PAD), lambda i: (0, 0)),      # rb2
                pl.BlockSpec((E, D, 2 * D), lambda i: (0, 0, 0)),     # ew1
                pl.BlockSpec((E, 1, 2 * D), lambda i: (0, 0, 0)),     # eb1
                pl.BlockSpec((E, 2 * D, D), lambda i: (0, 0, 0)),     # ew2
                pl.BlockSpec((E, 1, D), lambda i: (0, 0, 0)),         # eb2
            ],
            out_specs=pl.BlockSpec((bm, D), lambda i: (i, 0)),
            scratch_shapes=[],
        )
        kernel = _resident_kernel
        dim_sem = ("parallel",)
    else:
        grid_spec = pltpu.PrefetchScalarGridSpec(
            num_scalar_prefetch=0,
            grid=(n_btiles, E),
            in_specs=[
                pl.BlockSpec((bm, D), lambda i, e: (i, 0)),               # x
                pl.BlockSpec((D, hid), lambda i, e: (0, 0)),              # rw1
                pl.BlockSpec((1, hid), lambda i, e: (0, 0)),              # rb1
                pl.BlockSpec((hid, ROUTER_PAD), lambda i, e: (0, 0)),     # rw2
                pl.BlockSpec((1, ROUTER_PAD), lambda i, e: (0, 0)),       # rb2
                pl.BlockSpec((None, D, 2 * D), lambda i, e: (e, 0, 0)),   # ew1
                pl.BlockSpec((None, 1, 2 * D), lambda i, e: (e, 0, 0)),   # eb1
                pl.BlockSpec((None, 2 * D, D), lambda i, e: (e, 0, 0)),   # ew2
                pl.BlockSpec((None, 1, D), lambda i, e: (e, 0, 0)),       # eb2
            ],
            out_specs=pl.BlockSpec((bm, D), lambda i, e: (i, 0)),
            scratch_shapes=[pltpu.VMEM((bm, ROUTER_PAD), jnp.float32)],
        )
        kernel = _streaming_kernel
        dim_sem = ("parallel", "arbitrary")

    out = pl.pallas_call(
        kernel,
        out_shape=jax.ShapeDtypeStruct((Bp, D), jnp.float32),
        grid_spec=grid_spec,
        compiler_params=pltpu.CompilerParams(
            dimension_semantics=dim_sem,
            vmem_limit_bytes=int(budget),
        ),
        cost_estimate=cost,
    )(x, rw1, rb1, rw2, rb2, ew1, eb1, ew2, eb2)

    return out[:B] if pad_b else out


# ----------------------------------------------------------------------------
# params / reference / test
# ----------------------------------------------------------------------------
def init_params(key, dim, num_experts=NUM_EXPERTS):
    """Deterministic synthetic parameters matching the PyTorch module shapes
    (stored (in, out) so the kernel computes x @ W)."""
    hid = dim // 2
    ehid = dim * 2
    ks = jax.random.split(key, 8)
    s = 0.1
    return {
        "rw1": s * jax.random.normal(ks[0], (dim, hid), jnp.float32),
        "rb1": s * jax.random.normal(ks[1], (1, hid), jnp.float32),
        "rw2": s * jax.random.normal(ks[2], (hid, num_experts), jnp.float32),
        "rb2": s * jax.random.normal(ks[3], (1, num_experts), jnp.float32),
        "ew1": s * jax.random.normal(ks[4], (num_experts, dim, ehid), jnp.float32),
        "eb1": s * jax.random.normal(ks[5], (num_experts, 1, ehid), jnp.float32),
        "ew2": s * jax.random.normal(ks[6], (num_experts, ehid, dim), jnp.float32),
        "eb2": s * jax.random.normal(ks[7], (num_experts, 1, dim), jnp.float32),
    }


def reference(x, p):
    """Pure-JAX f32 reference mirroring the PyTorch forward."""
    h = jnp.maximum(x @ p["rw1"] + p["rb1"], 0.0)
    logits = h @ p["rw2"] + p["rb2"]
    route_w = jax.nn.softmax(logits, axis=-1)                 # (B, E)
    outs = []
    for e in range(p["ew1"].shape[0]):
        he = jnp.maximum(x @ p["ew1"][e] + p["eb1"][e], 0.0)
        outs.append(he @ p["ew2"][e] + p["eb2"][e])
    expert_out = jnp.stack(outs, axis=1)                      # (B, E, D)
    return jnp.sum(expert_out * route_w[..., None], axis=1)   # (B, D)


if __name__ == "__main__":
    B, DIM = 8, 32
    key = jax.random.PRNGKey(0)
    kx, kp = jax.random.split(key)
    x = jax.random.normal(kx, (B, DIM), jnp.float32)
    params = init_params(kp, DIM)

    ref = reference(x, params)

    # default (resident-experts) path
    out = jax.block_until_ready(hierarchical_router(x, params))
    assert out.shape == (B, DIM)
    assert jnp.allclose(out, ref, atol=2e-2, rtol=2e-2), "resident path mismatch"

    # streaming (per-expert weight) fallback path, exercised explicitly
    out_s = jax.block_until_ready(
        hierarchical_router(x, params, force_streaming=True))
    assert jnp.allclose(out_s, ref, atol=2e-2, rtol=2e-2), "streaming path mismatch"

    print("KERNEL_OK")
</pallas_src>

<mosaic_0001>
module attributes {stable_mosaic.version = 11 : i64} {
  func.func @_resident_kernel(%arg0: i32, %arg1: memref<8x32xf32, #tpu.memory_space<vmem>>, %arg2: memref<32x16xbf16, #tpu.memory_space<vmem>>, %arg3: memref<1x16xf32, #tpu.memory_space<vmem>>, %arg4: memref<16x128xbf16, #tpu.memory_space<vmem>>, %arg5: memref<1x128xf32, #tpu.memory_space<vmem>>, %arg6: memref<4x32x64xbf16, #tpu.memory_space<vmem>>, %arg7: memref<4x1x64xf32, #tpu.memory_space<vmem>>, %arg8: memref<4x64x32xbf16, #tpu.memory_space<vmem>>, %arg9: memref<4x1x32xf32, #tpu.memory_space<vmem>>, %arg10: memref<8x32xf32, #tpu.memory_space<vmem>>) attributes {dimension_semantics = [#tpu.dimension_semantics<parallel>], iteration_bounds = array<i64: 1>, scalar_prefetch = 0 : i64, scratch_operands = 0 : i64, tpu.core_type = #tpu.core_type<tc>, window_params = [{transform_indices = @transform_0, window_bounds = array<i64: 8, 32>}, {pipeline_mode = #tpu.pipeline_mode<synchronous>, transform_indices = @transform_1, window_bounds = array<i64: 32, 16>}, {pipeline_mode = #tpu.pipeline_mode<synchronous>, transform_indices = @transform_2, window_bounds = array<i64: 1, 16>}, {pipeline_mode = #tpu.pipeline_mode<synchronous>, transform_indices = @transform_3, window_bounds = array<i64: 16, 128>}, {pipeline_mode = #tpu.pipeline_mode<synchronous>, transform_indices = @transform_4, window_bounds = array<i64: 1, 128>}, {pipeline_mode = #tpu.pipeline_mode<synchronous>, transform_indices = @transform_5, window_bounds = array<i64: 4, 32, 64>}, {pipeline_mode = #tpu.pipeline_mode<synchronous>, transform_indices = @transform_6, window_bounds = array<i64: 4, 1, 64>}, {pipeline_mode = #tpu.pipeline_mode<synchronous>, transform_indices = @transform_7, window_bounds = array<i64: 4, 64, 32>}, {pipeline_mode = #tpu.pipeline_mode<synchronous>, transform_indices = @transform_8, window_bounds = array<i64: 4, 1, 32>}, {transform_indices = @transform_9, window_bounds = array<i64: 8, 32>}]} {
    %c0 = arith.constant 0 : index
    %c0_0 = arith.constant 0 : index
    %0 = vector.load %arg1[%c0, %c0_0] : memref<8x32xf32, #tpu.memory_space<vmem>>, vector<8x32xf32>
    %1 = arith.truncf %0 : vector<8x32xf32> to vector<8x32xbf16>
    %c0_1 = arith.constant 0 : index
    %c0_2 = arith.constant 0 : index
    %2 = vector.load %arg2[%c0_1, %c0_2] : memref<32x16xbf16, #tpu.memory_space<vmem>>, vector<32x16xbf16>
    %cst = arith.constant dense<0.000000e+00> : vector<8x16xf32>
    %3 = tpu.matmul %1, %2, %cst {dimension_numbers = #tpu.dot_dimension_numbers<[1], [0], [0], [1], [0, 0, 1, 1], [], []>} : vector<8x32xbf16>, vector<32x16xbf16>, vector<8x16xf32> -> vector<8x16xf32>
    %c0_3 = arith.constant 0 : index
    %c0_4 = arith.constant 0 : index
    %4 = vector.load %arg3[%c0_3, %c0_4] : memref<1x16xf32, #tpu.memory_space<vmem>>, vector<1x16xf32>
    %5 = vector.broadcast %4 : vector<1x16xf32> to vector<8x16xf32>
    %6 = arith.addf %3, %5 : vector<8x16xf32>
    %cst_5 = arith.constant 0.000000e+00 : f32
    %7 = vector.broadcast %cst_5 : f32 to vector<8x16xf32>
    %8 = arith.maximumf %6, %7 : vector<8x16xf32>
    %9 = arith.truncf %8 : vector<8x16xf32> to vector<8x16xbf16>
    %c0_6 = arith.constant 0 : index
    %c0_7 = arith.constant 0 : index
    %10 = vector.load %arg4[%c0_6, %c0_7] : memref<16x128xbf16, #tpu.memory_space<vmem>>, vector<16x128xbf16>
    %cst_8 = arith.constant dense<0.000000e+00> : vector<8x128xf32>
    %11 = tpu.matmul %9, %10, %cst_8 {dimension_numbers = #tpu.dot_dimension_numbers<[1], [0], [0], [1], [0, 0, 1, 1], [], []>} : vector<8x16xbf16>, vector<16x128xbf16>, vector<8x128xf32> -> vector<8x128xf32>
    %c0_9 = arith.constant 0 : index
    %c0_10 = arith.constant 0 : index
    %12 = vector.load %arg5[%c0_9, %c0_10] : memref<1x128xf32, #tpu.memory_space<vmem>>, vector<1x128xf32>
    %13 = vector.broadcast %12 : vector<1x128xf32> to vector<8x128xf32>
    %14 = arith.addf %11, %13 : vector<8x128xf32>
    %cst_11 = arith.constant dense<0xFF800000> : vector<8xf32>
    %15 = vector.multi_reduction <maximumf>, %14, %cst_11 [1] : vector<8x128xf32> to vector<8xf32>
    %16 = vector.shape_cast %15 : vector<8xf32> to vector<8x1xf32>
    %17 = vector.broadcast %16 : vector<8x1xf32> to vector<8x128xf32>
    %18 = arith.subf %14, %17 : vector<8x128xf32>
    %19 = math.exp %18 : vector<8x128xf32>
    %cst_12 = arith.constant dense<0.000000e+00> : vector<8xf32>
    %20 = vector.multi_reduction <add>, %19, %cst_12 [1] : vector<8x128xf32> to vector<8xf32>
    %21 = vector.shape_cast %20 : vector<8xf32> to vector<8x1xf32>
    %22 = vector.broadcast %21 : vector<8x1xf32> to vector<8x128xf32>
    %23 = arith.divf %19, %22 : vector<8x128xf32>
    %c0_13 = arith.constant 0 : index
    %c0_14 = arith.constant 0 : index
    %c0_15 = arith.constant 0 : index
    %24 = vector.load %arg6[%c0_13, %c0_14, %c0_15] : memref<4x32x64xbf16, #tpu.memory_space<vmem>>, vector<1x32x64xbf16>
    %25 = vector.shape_cast %24 : vector<1x32x64xbf16> to vector<32x64xbf16>
    %cst_16 = arith.constant dense<0.000000e+00> : vector<8x64xf32>
    %26 = tpu.matmul %1, %25, %cst_16 {dimension_numbers = #tpu.dot_dimension_numbers<[1], [0], [0], [1], [0, 0, 1, 1], [], []>} : vector<8x32xbf16>, vector<32x64xbf16>, vector<8x64xf32> -> vector<8x64xf32>
    %c0_17 = arith.constant 0 : index
    %c0_18 = arith.constant 0 : index
    %c0_19 = arith.constant 0 : index
    %27 = vector.load %arg7[%c0_17, %c0_18, %c0_19] : memref<4x1x64xf32, #tpu.memory_space<vmem>>, vector<1x1x64xf32>
    %28 = vector.shape_cast %27 : vector<1x1x64xf32> to vector<1x64xf32>
    %29 = vector.broadcast %28 : vector<1x64xf32> to vector<8x64xf32>
    %30 = arith.addf %26, %29 : vector<8x64xf32>
    %cst_20 = arith.constant 0.000000e+00 : f32
    %31 = vector.broadcast %cst_20 : f32 to vector<8x64xf32>
    %32 = arith.maximumf %30, %31 : vector<8x64xf32>
    %33 = arith.truncf %32 : vector<8x64xf32> to vector<8x64xbf16>
    %c0_21 = arith.constant 0 : index
    %c0_22 = arith.constant 0 : index
    %c0_23 = arith.constant 0 : index
    %34 = vector.load %arg8[%c0_21, %c0_22, %c0_23] : memref<4x64x32xbf16, #tpu.memory_space<vmem>>, vector<1x64x32xbf16>
    %35 = vector.shape_cast %34 : vector<1x64x32xbf16> to vector<64x32xbf16>
    %cst_24 = arith.constant dense<0.000000e+00> : vector<8x32xf32>
    %36 = tpu.matmul %33, %35, %cst_24 {dimension_numbers = #tpu.dot_dimension_numbers<[1], [0], [0], [1], [0, 0, 1, 1], [], []>} : vector<8x64xbf16>, vector<64x32xbf16>, vector<8x32xf32> -> vector<8x32xf32>
    %c0_25 = arith.constant 0 : index
    %c0_26 = arith.constant 0 : index
    %c0_27 = arith.constant 0 : index
    %37 = vector.load %arg9[%c0_25, %c0_26, %c0_27] : memref<4x1x32xf32, #tpu.memory_space<vmem>>, vector<1x1x32xf32>
    %38 = vector.shape_cast %37 : vector<1x1x32xf32> to vector<1x32xf32>
    %39 = vector.broadcast %38 : vector<1x32xf32> to vector<8x32xf32>
    %40 = arith.addf %36, %39 : vector<8x32xf32>
    %41 = vector.extract_strided_slice %23 {offsets = [0, 0], sizes = [8, 1], strides = [1, 1]} : vector<8x128xf32> to vector<8x1xf32>
    %42 = vector.broadcast %41 : vector<8x1xf32> to vector<8x32xf32>
    %43 = arith.mulf %42, %40 : vector<8x32xf32>
    %c1 = arith.constant 1 : index
    %c0_28 = arith.constant 0 : index
    %c0_29 = arith.constant 0 : index
    %44 = vector.load %arg6[%c1, %c0_28, %c0_29] : memref<4x32x64xbf16, #tpu.memory_space<vmem>>, vector<1x32x64xbf16>
    %45 = vector.shape_cast %44 : vector<1x32x64xbf16> to vector<32x64xbf16>
    %cst_30 = arith.constant dense<0.000000e+00> : vector<8x64xf32>
    %46 = tpu.matmul %1, %45, %cst_30 {dimension_numbers = #tpu.dot_dimension_numbers<[1], [0], [0], [1], [0, 0, 1, 1], [], []>} : vector<8x32xbf16>, vector<32x64xbf16>, vector<8x64xf32> -> vector<8x64xf32>
    %c1_31 = arith.constant 1 : index
    %c0_32 = arith.constant 0 : index
    %c0_33 = arith.constant 0 : index
    %47 = vector.load %arg7[%c1_31, %c0_32, %c0_33] : memref<4x1x64xf32, #tpu.memory_space<vmem>>, vector<1x1x64xf32>
    %48 = vector.shape_cast %47 : vector<1x1x64xf32> to vector<1x64xf32>
    %49 = vector.broadcast %48 : vector<1x64xf32> to vector<8x64xf32>
    %50 = arith.addf %46, %49 : vector<8x64xf32>
    %cst_34 = arith.constant 0.000000e+00 : f32
    %51 = vector.broadcast %cst_34 : f32 to vector<8x64xf32>
    %52 = arith.maximumf %50, %51 : vector<8x64xf32>
    %53 = arith.truncf %52 : vector<8x64xf32> to vector<8x64xbf16>
    %c1_35 = arith.constant 1 : index
    %c0_36 = arith.constant 0 : index
    %c0_37 = arith.constant 0 : index
    %54 = vector.load %arg8[%c1_35, %c0_36, %c0_37] : memref<4x64x32xbf16, #tpu.memory_space<vmem>>, vector<1x64x32xbf16>
    %55 = vector.shape_cast %54 : vector<1x64x32xbf16> to vector<64x32xbf16>
    %cst_38 = arith.constant dense<0.000000e+00> : vector<8x32xf32>
    %56 = tpu.matmul %53, %55, %cst_38 {dimension_numbers = #tpu.dot_dimension_numbers<[1], [0], [0], [1], [0, 0, 1, 1], [], []>} : vector<8x64xbf16>, vector<64x32xbf16>, vector<8x32xf32> -> vector<8x32xf32>
    %c1_39 = arith.constant 1 : index
    %c0_40 = arith.constant 0 : index
    %c0_41 = arith.constant 0 : index
    %57 = vector.load %arg9[%c1_39, %c0_40, %c0_41] : memref<4x1x32xf32, #tpu.memory_space<vmem>>, vector<1x1x32xf32>
    %58 = vector.shape_cast %57 : vector<1x1x32xf32> to vector<1x32xf32>
    %59 = vector.broadcast %58 : vector<1x32xf32> to vector<8x32xf32>
    %60 = arith.addf %56, %59 : vector<8x32xf32>
    %61 = vector.extract_strided_slice %23 {offsets = [0, 1], sizes = [8, 1], strides = [1, 1]} : vector<8x128xf32> to vector<8x1xf32>
    %62 = vector.broadcast %61 : vector<8x1xf32> to vector<8x32xf32>
    %63 = arith.mulf %62, %60 : vector<8x32xf32>
    %64 = arith.addf %43, %63 : vector<8x32xf32>
    %c2 = arith.constant 2 : index
    %c0_42 = arith.constant 0 : index
    %c0_43 = arith.constant 0 : index
    %65 = vector.load %arg6[%c2, %c0_42, %c0_43] : memref<4x32x64xbf16, #tpu.memory_space<vmem>>, vector<1x32x64xbf16>
    %66 = vector.shape_cast %65 : vector<1x32x64xbf16> to vector<32x64xbf16>
    %cst_44 = arith.constant dense<0.000000e+00> : vector<8x64xf32>
    %67 = tpu.matmul %1, %66, %cst_44 {dimension_numbers = #tpu.dot_dimension_numbers<[1], [0], [0], [1], [0, 0, 1, 1], [], []>} : vector<8x32xbf16>, vector<32x64xbf16>, vector<8x64xf32> -> vector<8x64xf32>
    %c2_45 = arith.constant 2 : index
    %c0_46 = arith.constant 0 : index
    %c0_47 = arith.constant 0 : index
    %68 = vector.load %arg7[%c2_45, %c0_46, %c0_47] : memref<4x1x64xf32, #tpu.memory_space<vmem>>, vector<1x1x64xf32>
    %69 = vector.shape_cast %68 : vector<1x1x64xf32> to vector<1x64xf32>
    %70 = vector.broadcast %69 : vector<1x64xf32> to vector<8x64xf32>
    %71 = arith.addf %67, %70 : vector<8x64xf32>
    %cst_48 = arith.constant 0.000000e+00 : f32
    %72 = vector.broadcast %cst_48 : f32 to vector<8x64xf32>
    %73 = arith.maximumf %71, %72 : vector<8x64xf32>
    %74 = arith.truncf %73 : vector<8x64xf32> to vector<8x64xbf16>
    %c2_49 = arith.constant 2 : index
    %c0_50 = arith.constant 0 : index
    %c0_51 = arith.constant 0 : index
    %75 = vector.load %arg8[%c2_49, %c0_50, %c0_51] : memref<4x64x32xbf16, #tpu.memory_space<vmem>>, vector<1x64x32xbf16>
    %76 = vector.shape_cast %75 : vector<1x64x32xbf16> to vector<64x32xbf16>
    %cst_52 = arith.constant dense<0.000000e+00> : vector<8x32xf32>
    %77 = tpu.matmul %74, %76, %cst_52 {dimension_numbers = #tpu.dot_dimension_numbers<[1], [0], [0], [1], [0, 0, 1, 1], [], []>} : vector<8x64xbf16>, vector<64x32xbf16>, vector<8x32xf32> -> vector<8x32xf32>
    %c2_53 = arith.constant 2 : index
    %c0_54 = arith.constant 0 : index
    %c0_55 = arith.constant 0 : index
    %78 = vector.load %arg9[%c2_53, %c0_54, %c0_55] : memref<4x1x32xf32, #tpu.memory_space<vmem>>, vector<1x1x32xf32>
    %79 = vector.shape_cast %78 : vector<1x1x32xf32> to vector<1x32xf32>
    %80 = vector.broadcast %79 : vector<1x32xf32> to vector<8x32xf32>
    %81 = arith.addf %77, %80 : vector<8x32xf32>
    %82 = vector.extract_strided_slice %23 {offsets = [0, 2], sizes = [8, 1], strides = [1, 1]} : vector<8x128xf32> to vector<8x1xf32>
    %83 = vector.broadcast %82 : vector<8x1xf32> to vector<8x32xf32>
    %84 = arith.mulf %83, %81 : vector<8x32xf32>
    %85 = arith.addf %64, %84 : vector<8x32xf32>
    %c3 = arith.constant 3 : index
    %c0_56 = arith.constant 0 : index
    %c0_57 = arith.constant 0 : index
    %86 = vector.load %arg6[%c3, %c0_56, %c0_57] : memref<4x32x64xbf16, #tpu.memory_space<vmem>>, vector<1x32x64xbf16>
    %87 = vector.shape_cast %86 : vector<1x32x64xbf16> to vector<32x64xbf16>
    %cst_58 = arith.constant dense<0.000000e+00> : vector<8x64xf32>
    %88 = tpu.matmul %1, %87, %cst_58 {dimension_numbers = #tpu.dot_dimension_numbers<[1], [0], [0], [1], [0, 0, 1, 1], [], []>} : vector<8x32xbf16>, vector<32x64xbf16>, vector<8x64xf32> -> vector<8x64xf32>
    %c3_59 = arith.constant 3 : index
    %c0_60 = arith.constant 0 : index
    %c0_61 = arith.constant 0 : index
    %89 = vector.load %arg7[%c3_59, %c0_60, %c0_61] : memref<4x1x64xf32, #tpu.memory_space<vmem>>, vector<1x1x64xf32>
    %90 = vector.shape_cast %89 : vector<1x1x64xf32> to vector<1x64xf32>
    %91 = vector.broadcast %90 : vector<1x64xf32> to vector<8x64xf32>
    %92 = arith.addf %88, %91 : vector<8x64xf32>
    %cst_62 = arith.constant 0.000000e+00 : f32
    %93 = vector.broadcast %cst_62 : f32 to vector<8x64xf32>
    %94 = arith.maximumf %92, %93 : vector<8x64xf32>
    %95 = arith.truncf %94 : vector<8x64xf32> to vector<8x64xbf16>
    %c3_63 = arith.constant 3 : index
    %c0_64 = arith.constant 0 : index
    %c0_65 = arith.constant 0 : index
    %96 = vector.load %arg8[%c3_63, %c0_64, %c0_65] : memref<4x64x32xbf16, #tpu.memory_space<vmem>>, vector<1x64x32xbf16>
    %97 = vector.shape_cast %96 : vector<1x64x32xbf16> to vector<64x32xbf16>
    %cst_66 = arith.constant dense<0.000000e+00> : vector<8x32xf32>
    %98 = tpu.matmul %95, %97, %cst_66 {dimension_numbers = #tpu.dot_dimension_numbers<[1], [0], [0], [1], [0, 0, 1, 1], [], []>} : vector<8x64xbf16>, vector<64x32xbf16>, vector<8x32xf32> -> vector<8x32xf32>
    %c3_67 = arith.constant 3 : index
    %c0_68 = arith.constant 0 : index
    %c0_69 = arith.constant 0 : index
    %99 = vector.load %arg9[%c3_67, %c0_68, %c0_69] : memref<4x1x32xf32, #tpu.memory_space<vmem>>, vector<1x1x32xf32>
    %100 = vector.shape_cast %99 : vector<1x1x32xf32> to vector<1x32xf32>
    %101 = vector.broadcast %100 : vector<1x32xf32> to vector<8x32xf32>
    %102 = arith.addf %98, %101 : vector<8x32xf32>
    %103 = vector.extract_strided_slice %23 {offsets = [0, 3], sizes = [8, 1], strides = [1, 1]} : vector<8x128xf32> to vector<8x1xf32>
    %104 = vector.broadcast %103 : vector<8x1xf32> to vector<8x32xf32>
    %105 = arith.mulf %104, %102 : vector<8x32xf32>
    %106 = arith.addf %85, %105 : vector<8x32xf32>
    %c0_70 = arith.constant 0 : index
    %c0_71 = arith.constant 0 : index
    %107 = vector.load %arg10[%c0_70, %c0_71] : memref<8x32xf32, #tpu.memory_space<vmem>>, vector<8x32xf32>
    tpu.vector_store %arg10[%c0_70, %c0_71], %106 {strides = array<i32>} : memref<8x32xf32, #tpu.memory_space<vmem>>, vector<8x32xf32>,
    return
  }
  func.func @transform_0(%arg0: i32) -> (i32, i32) {
    %c0_i32 = arith.constant 0 : i32
    %c0_i32_0 = arith.constant 0 : i32
    return %arg0, %c0_i32 : i32, i32
  }
  func.func @transform_1(%arg0: i32) -> (i32, i32) {
    %c0_i32 = arith.constant 0 : i32
    %c0_i32_0 = arith.constant 0 : i32
    %c0_i32_1 = arith.constant 0 : i32
    return %c0_i32, %c0_i32_0 : i32, i32
  }
  func.func @transform_2(%arg0: i32) -> (i32, i32) {
    %c0_i32 = arith.constant 0 : i32
    %c0_i32_0 = arith.constant 0 : i32
    %c0_i32_1 = arith.constant 0 : i32
    return %c0_i32, %c0_i32_0 : i32, i32
  }
  func.func @transform_3(%arg0: i32) -> (i32, i32) {
    %c0_i32 = arith.constant 0 : i32
    %c0_i32_0 = arith.constant 0 : i32
    %c0_i32_1 = arith.constant 0 : i32
    return %c0_i32, %c0_i32_0 : i32, i32
  }
  func.func @transform_4(%arg0: i32) -> (i32, i32) {
    %c0_i32 = arith.constant 0 : i32
    %c0_i32_0 = arith.constant 0 : i32
    %c0_i32_1 = arith.constant 0 : i32
    return %c0_i32, %c0_i32_0 : i32, i32
  }
  func.func @transform_5(%arg0: i32) -> (i32, i32, i32) {
    %c0_i32 = arith.constant 0 : i32
    %c0_i32_0 = arith.constant 0 : i32
    %c0_i32_1 = arith.constant 0 : i32
    %c0_i32_2 = arith.constant 0 : i32
    return %c0_i32, %c0_i32_0, %c0_i32_1 : i32, i32, i32
  }
  func.func @transform_6(%arg0: i32) -> (i32, i32, i32) {
    %c0_i32 = arith.constant 0 : i32
    %c0_i32_0 = arith.constant 0 : i32
    %c0_i32_1 = arith.constant 0 : i32
    %c0_i32_2 = arith.constant 0 : i32
    return %c0_i32, %c0_i32_0, %c0_i32_1 : i32, i32, i32
  }
  func.func @transform_7(%arg0: i32) -> (i32, i32, i32) {
    %c0_i32 = arith.constant 0 : i32
    %c0_i32_0 = arith.constant 0 : i32
    %c0_i32_1 = arith.constant 0 : i32
    %c0_i32_2 = arith.constant 0 : i32
    return %c0_i32, %c0_i32_0, %c0_i32_1 : i32, i32, i32
  }
  func.func @transform_8(%arg0: i32) -> (i32, i32, i32) {
    %c0_i32 = arith.constant 0 : i32
    %c0_i32_0 = arith.constant 0 : i32
    %c0_i32_1 = arith.constant 0 : i32
    %c0_i32_2 = arith.constant 0 : i32
    return %c0_i32, %c0_i32_0, %c0_i32_1 : i32, i32, i32
  }
  func.func @transform_9(%arg0: i32) -> (i32, i32) {
    %c0_i32 = arith.constant 0 : i32
    %c0_i32_0 = arith.constant 0 : i32
    return %arg0, %c0_i32 : i32, i32
  }
}

</mosaic_0001>

<bundles_post_ra>
// kernel: hierarchical_router.1
= control target key start
LH: loop header
LB: loop body
LE: loop exit
PB: predicated region body
PF: predicated region fallthrough
CT: control target
= control target key end

     0   :  { %v1100_v1 = vmov 0.0   ;;  %vm1101_vm0 = vmmov 0   ;;  %vm59_vm1 = vcmask 261120   ;;  %s1347_s0 = inlined_call_operand.vmem [shape: f32[8,32], index: 0, kind: input, shape index: {}]   ;;  %s1348_s1 = inlined_call_operand.vmem [shape: bf16[32,16], index: 1, kind: input, shape index: {}]   ;;  %s1349_s2 = inlined_call_operand.vmem [shape: f32[1,16], index: 2, kind: input, shape index: {}]   ;;  %s1350_s3 = inlined_call_operand.vmem [shape: bf16[16,128], index: 3, kind: input, shape index: {}]   ;;  %s1351_s4 = inlined_call_operand.vmem [shape: f32[1,128], index: 4, kind: input, shape index: {}]   ;;  %s1352_s5 = inlined_call_operand.vmem [shape: bf16[4,32,64], index: 5, kind: input, shape index: {}]   ;;  %s1353_s6 = inlined_call_operand.vmem [shape: f32[4,1,64], index: 6, kind: input, shape index: {}]   ;;  %s1354_s7 = inlined_call_operand.vmem [shape: bf16[4,64,32], index: 7, kind: input, shape index: {}]   ;;  %s1355_s8 = inlined_call_operand.vmem [shape: f32[4,1,32], index: 8, kind: input, shape index: {}]   ;;  %s1356_s9 = inlined_call_operand.hbm [shape: f32[8,32], index: 9, kind: output, shape index: {}]  }
   0x1   :  { %v1045_v0 = vld [vmem:[%s1348_s1] sm:$0xff]   ;;  %939 = vmatprep.subr.bf16.mxu0 %v1100_v1  ;;  %v1046_v2 = vld [vmem:[%s1348_s1 + $0x8] sm:$0xff]   ;;  %953 = vmatprep.subr.bf16.mxu1 %v1100_v1 }
   0x2   :  { %940 = vmatpush3.bf16.msra.mxu0 %v1045_v0  ;;  %943 = vmatprep.mubr.msk.bf16.mxu0 %vm1101_vm0, %v1100_v1  ;;  %v34_v3 = vld [vmem:[%s1347_s0] sm:$0xff]  ;;  %v1049_v7 = vld [vmem:[%s1352_s5 + $0x8] sm:$0xff]  }
   0x3   :  { %941 = vmatprep.subr.bf16.mxu0 %v1100_v1  ;;  %v1047_v4 = vld [vmem:[%s1352_s5] sm:$0xff]   ;;  %957 = vmatprep.mubr.msk.bf16.mxu1 %vm1101_vm0, %v1100_v1  ;;  %v1176_v5 = vpack.c.bf16 %v34_v3, %v34_v3 }
   0x4   :  { %954 = vmatpush3.bf16.msra.mxu1 %v1047_v4  ;;  %v1048_v6 = vld [vmem:[%s1350_s3] sm:$0xff]  }
   0x5   :  { %955 = vmatprep.subr.bf16.mxu1 %v1100_v1 }
   0x6   :  { %942 = vmatpush3.bf16.msra.mxu0 %v1046_v2 }
   0x7   :  { %947 = vmatprep.subr.bf16.mxu0 %v1100_v1 }
   0x8   :  { %956 = vmatpush3.bf16.msra.mxu1 %v1049_v7 }
   0x9   :  { %944 = vmatmul.mubr.msk.bf16.vlgmr.msra.gmra.mrb[0].mxu0 %vm59_vm1, %v1176_v5  ;;  %973 = vmatprep.subr.bf16.mxu1 %v1100_v1 }
   0xa   :  { %948 = vmatpush3.bf16.msra.mxu0 %v1048_v6  ;;  %949 = vmatprep.mubr.msk.bf16.mxu0 %vm1101_vm0, %v1100_v1 }
   0xb   :  { %961 = vmatprep.subr.bf16.mxu0 %v1100_v1  ;;  %958 = vmatmul.mubr.msk.bf16.vlgmr.msra.gmra.mrb[0].mxu1 %vm59_vm1, %v1176_v5 }
   0xc   :  { %977 = vmatprep.mubr.msk.bf16.mxu1 %vm1101_vm0, %v1100_v1 }
   0xd   :  { %14 = vsyncpa [#allocation3], 0  ;;  %v1050_v8 = vld [vmem:[%s1352_s5 + $0x10] sm:$0xff]   ;;  %v1051_v9 = vld [vmem:[%s1352_s5 + $0x18] sm:$0xff]   ;;  %vm120_vm2 = vcmask 130048   ;;  %vm277_vm3 = vcmask 523264  }
   0xe   :  { %974 = vmatpush3.bf16.msra.mxu1 %v1050_v8  ;;  %v1055_v10 = vld [vmem:[%s1354_s7 + $0x20] sm:$0xff]   ;;  %v1057_v11 = vld [vmem:[%s1354_s7 + $0x28] sm:$0xff]   ;;  %v1054_v26 = vld [vmem:[%s1354_s7 + $0x10] sm:$0xff]   ;;  %s1106_s28 = smov [#allocation2]  }
   0xf   :  { %975 = vmatprep.subr.bf16.mxu1 %v1100_v1  ;;  %v813_v12 = vld [vmem:[%s1349_s2] ss:$0 sm:$0xff]  ;;  %v1053_v25 = vld [vmem:[%s1354_s7 + $0x8] sm:$0xff]   ;;  %v1056_v27 = vld [vmem:[%s1354_s7 + $0x18] sm:$0xff]  }
  0x10   :  { %v1052_v20 = vld [vmem:[%s1354_s7] sm:$0xff]   ;;  %v1058_v32 = vld [vmem:[%s1354_s7 + $0x30] sm:$0xff]   ;;  %v1060_v36 = vld [vmem:[%s1354_s7 + $0x38] sm:$0xff]  }
  0x11   :  { %v820_v28 = vld [vmem:[%s1353_s6] ss:$0 sm:$0xff]  ;;  %v835_v33 = vld [vmem:[%s1353_s6 + $0x1] ss:$0 sm:$0xff]  ;;  %v1061_v39 = vld [vmem:[%s1352_s5 + $0x28] sm:$0xff]  }
  0x12   :  { %976 = vmatpush3.bf16.msra.mxu1 %v1051_v9  ;;  %v1059_v34 = vld [vmem:[%s1352_s5 + $0x20] sm:$0xff]   ;;  %v1062_v43 = vld [vmem:[%s1352_s5 + $0x30] sm:$0xff]   ;;  %v1063_v45 = vld [vmem:[%s1352_s5 + $0x38] sm:$0xff]   ;;  %s805_s5 = sshll.u32 %s1106_s28, 4  ;;  %s806_s5 = int_to_ptr.vmem [resolvable:$true] %s805_s5 }
  0x13   :  { %981 = vmatprep.subr.bf16.mxu1 %v1100_v1  ;;  %v817_v46 = vld [vmem:[%s1351_s4] ss:$0 sm:$0xff]  ;;  %v1065_v54 = vld [vmem:[%s1354_s7 + $0x48] sm:$0xff]   ;;  %v1067_v56 = vld [vmem:[%s1354_s7 + $0x50] sm:$0xff]   ;;  %s1076_s29 = scalar_lea.vmem %s806_s5, 128  ;;  %p1081_p1 = scmp.lt.s32.totalorder %s806_s5, %s806_s5 }
  0x14   :  { %v1064_v52 = vld [vmem:[%s1354_s7 + $0x40] sm:$0xff]   ;;  %v1068_v55 = vld [vmem:[%s1354_s7 + $0x68] sm:$0xff]   ;;  %v1070_v57 = vld [vmem:[%s1354_s7 + $0x70] sm:$0xff]   ;;  %p1077_p0 = scmp.ne.s32.totalorder %s806_s5, %s1076_s29  ;;  %p1082_p2 = scmp.lt.s32.totalorder %s1076_s29, %s1076_s29 }
  0x15   :  { %978 = vmatmul.mubr.msk.bf16.vlgmr.msra.gmra.mrb[4].mxu1 %vm59_vm1, %v1176_v5  ;;  %v1066_v53 = vld [vmem:[%s1354_s7 + $0x60] sm:$0xff]   ;;  %v1069_v58 = vld [vmem:[%s1354_s7 + $0x58] sm:$0xff]  }
  0x16   :  { %989 = vmatprep.mubr.msk.bf16.mxu1 %vm1101_vm0, %v1100_v1  ;;  %982 = vmatpush3.bf16.msra.mxu1 %v1055_v10  ;;  %v1071_v59 = vld [vmem:[%s1354_s7 + $0x78] sm:$0xff]   ;;  %v859_v0 = vld [vmem:[%s1353_s6 + $0x2] ss:$0 sm:$0xff]  ;;  %p1083_p3 = por %p1082_p2, %p1081_p1 }
  0x17   :  { %983 = vmatprep.subr.bf16.mxu1 %v1100_v1 }
  0x18   :  { %p1084_p4 = pnand %p1083_p3, %p1077_p0 }
  0x1a   :  { %984 = vmatpush3.bf16.msra.mxu1 %v1057_v11 }
  0x1b   :  { %985 = vmatprep.subr.bf16.mxu1 %v1100_v1 }
  0x1e   :  { %986 = vmatpush3.bf16.msra.mxu1 %v1058_v32 }
  0x1f   :  { %987 = vmatprep.subr.bf16.mxu1 %v1100_v1 }
  0x22   :  { %988 = vmatpush3.bf16.msra.mxu1 %v1060_v36 }
  0x23   :  { %1013 = vmatprep.subr.bf16.mxu1 %v1100_v1 }
  0xdc   :  { %v97_v13 = vpop.f32.mrb[0].mxu0 }
  0xdd   :  { %v98_v14 = vadd.f32 %v813_v12, %v97_v13  ;;  %v945_v15 = vpop.f32.mrb[1].mxu0  ;;  %v883_v12 = vld [vmem:[%s1353_s6 + $0x3] ss:$0 sm:$0xff] }
  0xde   :  { %v100_v16 = vpop.f32.mrb[2].mxu0  ;;  %v230_v19 = vpop.f32.mrb[0].mxu1 }
  0xdf   :  { %v103_v17 = vmax.f32 %v98_v14, 0.0  ;;  %v946_v18 = vpop.f32.mrb[3].mxu0  ;;  %v959_v21 = vpop.f32.mrb[1].mxu1  ;;  %v231_v29 = vadd.f32 %v820_v28, %v230_v19 }
  0xe0   :  { %v233_v23 = vpop.f32.mrb[2].mxu1 }
  0xe1   :  { %v104_v22 = vpack.c.bf16 %v103_v17, %v103_v17  ;;  %v960_v24 = vpop.f32.mrb[3].mxu1  ;;  %v236_v30 = vmax.f32 %v231_v29, 0.0 }
  0xe2   :  { %v1102_v24 = vmov 2  }
  0xe3   :  { %950 = vmatmul.mubr.msk.bf16.vlgmr.msra.gmra.mrb[4].mxu0 %vm120_vm2, %v104_v22  ;;  %v237_v31 = vpack.c.bf16 %v236_v30, %v236_v30  ;;  %1042 = vset.pattern.permute.xlu0 %v1102_v24 }
  0xe4   :  { %962 = vmatpush3.bf16.msra.mxu0 %v1052_v20  ;;  %969 = vmatprep.mubr.msk.bf16.mxu0 %vm1101_vm0, %v1100_v1 }
  0xe5   :  { %963 = vmatprep.subr.bf16.mxu0 %v1100_v1 }
  0xe8   :  { %964 = vmatpush3.bf16.msra.mxu0 %v1053_v25  ;;  %v386_v35 = vpop.f32.mrb[4].mxu1  ;;  %v1103_v25 = vmov 0  }
  0xe9   :  { %965 = vmatprep.subr.bf16.mxu0 %v1100_v1  ;;  %v387_v37 = vadd.f32 %v835_v33, %v386_v35  ;;  %v979_v38 = vpop.f32.mrb[5].mxu1  ;;  %1040 = vset.pattern.permute.xlu1 %v1103_v25  ;;  %v1104_v33 = vmov 1   ;;  %v1105_v35 = vmov 3  }
  0xea   :  { %v389_v40 = vpop.f32.mrb[6].mxu1 }
  0xeb   :  { %v392_v41 = vmax.f32 %v387_v37, 0.0  ;;  %v980_v42 = vpop.f32.mrb[7].mxu1  ;;  %v824_v40 = vld [vmem:[%s1355_s8] ss:$0 sm:$0xff] }
  0xec   :  { %966 = vmatpush3.bf16.msra.mxu0 %v1054_v26  ;;  %v872_v42 = vld [vmem:[%s1355_s8 + $0x2] ss:$0 sm:$0xff] }
  0xed   :  { %967 = vmatprep.subr.bf16.mxu0 %v1100_v1  ;;  %v393_v44 = vpack.c.bf16 %v392_v41, %v392_v41  ;;  %v848_v41 = vld [vmem:[%s1355_s8 + $0x1] ss:$0 sm:$0xff] }
  0xef   :  { %990 = vmatmul.mubr.msk.bf16.vlgmr.msra.gmra.mrb[8].mxu1 %vm277_vm3, %v393_v44 }
  0xf0   :  { %968 = vmatpush3.bf16.msra.mxu0 %v1056_v27  ;;  %1014 = vmatpush3.bf16.msra.mxu1 %v1062_v43 }
  0xf1   :  { %993 = vmatprep.subr.bf16.mxu0 %v1100_v1  ;;  %1015 = vmatprep.subr.bf16.mxu1 %v1100_v1 }
  0xf2   :  { %1017 = vmatprep.mubr.msk.bf16.mxu1 %vm1101_vm0, %v1100_v1 }
  0xf3   :  { %970 = vmatmul.mubr.msk.bf16.vlgmr.msra.gmra.mrb[8].mxu0 %vm277_vm3, %v237_v31 }
  0xf4   :  { %997 = vmatprep.mubr.msk.bf16.mxu0 %vm1101_vm0, %v1100_v1  ;;  %994 = vmatpush3.bf16.msra.mxu0 %v1059_v34 }
  0xf5   :  { %995 = vmatprep.subr.bf16.mxu0 %v1100_v1  ;;  %1016 = vmatpush3.bf16.msra.mxu1 %v1063_v45 }
  0xf6   :  { %1021 = vmatprep.subr.bf16.mxu1 %v1100_v1 }
  0xf8   :  { %996 = vmatpush3.bf16.msra.mxu0 %v1061_v39  ;;  %1018 = vmatmul.mubr.msk.bf16.vlgmr.msra.gmra.mrb[12].mxu1 %vm59_vm1, %v1176_v5 }
  0xf9   :  { %1001 = vmatprep.subr.bf16.mxu0 %v1100_v1  ;;  %1029 = vmatprep.mubr.msk.bf16.mxu1 %vm1101_vm0, %v1100_v1 }
  0xfa   :  { %1022 = vmatpush3.bf16.msra.mxu1 %v1066_v53 }
  0xfb   :  { %998 = vmatmul.mubr.msk.bf16.vlgmr.msra.gmra.mrb[12].mxu0 %vm59_vm1, %v1176_v5  ;;  %1023 = vmatprep.subr.bf16.mxu1 %v1100_v1 }
  0xfc   :  { %1009 = vmatprep.mubr.msk.bf16.mxu0 %vm1101_vm0, %v1100_v1  ;;  %1002 = vmatpush3.bf16.msra.mxu0 %v1064_v52 }
  0xfd   :  { %1003 = vmatprep.subr.bf16.mxu0 %v1100_v1 }
  0xfe   :  { %1024 = vmatpush3.bf16.msra.mxu1 %v1068_v55 }
  0xff   :  { %1025 = vmatprep.subr.bf16.mxu1 %v1100_v1 }
 0x100   :  { %1004 = vmatpush3.bf16.msra.mxu0 %v1065_v54 }
 0x101   :  { %1005 = vmatprep.subr.bf16.mxu0 %v1100_v1 }
 0x102   :  { %1026 = vmatpush3.bf16.msra.mxu1 %v1070_v57 }
 0x103   :  { %1027 = vmatprep.subr.bf16.mxu1 %v1100_v1 }
 0x104   :  { %1006 = vmatpush3.bf16.msra.mxu0 %v1067_v56 }
 0x105   :  { %1007 = vmatprep.subr.bf16.mxu0 %v1100_v1 }
 0x106   :  { %1028 = vmatpush3.bf16.msra.mxu1 %v1071_v59 }
 0x108   :  { %1008 = vmatpush3.bf16.msra.mxu0 %v1069_v58 }
 0x1b6   :  { %v158_v47 = vpop.f32.mrb[4].mxu0 }
 0x1b7   :  { %v159_v48 = vadd.f32 %v817_v46, %v158_v47  ;;  %v951_v49 = vpop.f32.mrb[5].mxu0  ;;  %v896_v46 = vld [vmem:[%s1355_s8 + $0x3] ss:$0 sm:$0xff] }
 0x1b8   :  { %v161_v50 = vpop.f32.mrb[6].mxu0 }
 0x1b9   :  { %164 = vmax.xlane.f32.xlu0 %v159_v48  ;;  %v952_v51 = vpop.f32.mrb[7].mxu0 }
 0x1c2   :  { %v472_v2 = vpop.f32.mrb[8].mxu1 }
 0x1c3   :  { %v991_v3 = vpop.f32.mrb[9].mxu1  ;;  %v473_v44 = vadd.f32 %v848_v41, %v472_v2 }
 0x1c4   :  { %v475_v6 = vpop.f32.mrb[10].mxu1 }
 0x1c5   :  { %v992_v8 = vpop.f32.mrb[11].mxu1 }
 0x1c6   :  { %v315_v60 = vpop.f32.mrb[8].mxu0 }
 0x1c7   :  { %v971_v61 = vpop.f32.mrb[9].mxu0  ;;  %v316_v43 = vadd.f32 %v824_v40, %v315_v60 }
 0x1c8   :  { %v318_v62 = vpop.f32.mrb[10].mxu0 }
 0x1c9   :  { %v972_v63 = vpop.f32.mrb[11].mxu0 }
 0x1cb   :  { %v700_v13 = vpop.f32.mrb[12].mxu1 }
 0x1cc   :  { %v701_v14 = vadd.f32 %v883_v12, %v700_v13  ;;  %v1019_v15 = vpop.f32.mrb[13].mxu1 }
 0x1cd   :  { %v703_v16 = vpop.f32.mrb[14].mxu1 }
 0x1ce   :  { %v543_v4 = vpop.f32.mrb[12].mxu0  ;;  %v706_v17 = vmax.f32 %v701_v14, 0.0  ;;  %v1020_v18 = vpop.f32.mrb[15].mxu1 }
 0x1cf   :  { %v544_v5 = vadd.f32 %v859_v0, %v543_v4  ;;  %v999_v7 = vpop.f32.mrb[13].mxu0 }
 0x1d0   :  { %v546_v9 = vpop.f32.mrb[14].mxu0  ;;  %v707_v19 = vpack.c.bf16 %v706_v17, %v706_v17 }
 0x1d1   :  { %v549_v10 = vmax.f32 %v544_v5, 0.0  ;;  %v1000_v1 = vpop.f32.mrb[15].mxu0 }
 0x1d2   :  { %1030 = vmatmul.mubr.msk.bf16.vlgmr.msra.gmra.mrb[16].mxu1 %vm277_vm3, %v707_v19 }
 0x1d3   :  { %v550_v11 = vpack.c.bf16 %v549_v10, %v549_v10 }
 0x1d5   :  { %1010 = vmatmul.mubr.msk.bf16.vlgmr.msra.gmra.mrb[16].mxu0 %vm277_vm3, %v550_v11 }
 0x246   :  { %v165_v20 = vpop.xlane.xlu0 %164 }
 0x247   :  { %v166_v21 = vsub.f32 %v159_v48, %v165_v20 }
 0x249   :  { %v167_v22 = vmul.f32 1.442695, %v166_v21 }
 0x24b   :  { %1072 = vpow2.f32 %v167_v22 }
 0x255   :  { %v1073_v23 = vpop.eup %1072 }
 0x256   :  { %169 = vadd.xlane.f32.xlu0 %v1073_v23 }
 0x2a5   :  { %v786_v34 = vpop.f32.mrb[16].mxu1 }
 0x2a6   :  { %v1031_v36 = vpop.f32.mrb[17].mxu1  ;;  %v787_v51 = vadd.f32 %v896_v46, %v786_v34 }
 0x2a7   :  { %v789_v37 = vpop.f32.mrb[18].mxu1 }
 0x2a8   :  { %v629_v28 = vpop.f32.mrb[16].mxu0  ;;  %v1032_v38 = vpop.f32.mrb[19].mxu1 }
 0x2a9   :  { %v1011_v30 = vpop.f32.mrb[17].mxu0  ;;  %v630_v45 = vadd.f32 %v872_v42, %v629_v28 }
 0x2aa   :  { %v632_v31 = vpop.f32.mrb[18].mxu0 }
 0x2ab   :  { %v1012_v32 = vpop.f32.mrb[19].mxu0 }
 0x2e3   :  { %v170_v26 = vpop.xlane.xlu0 %169 }
 0x2e4   :  { %1074 = vrcp.f32 %v170_v26 }
 0x2ee   :  { %v1075_v27 = vpop.eup %1074 }
 0x2ef   :  { %v172_v29 = vmul.f32 %v1075_v27, %v1073_v23 }
 0x2f1   :  { %636 = vperm.xlu0 %1042, %v172_v29   ;;  %323 = vperm.xlu1 %1040, %v172_v29  }
 0x2f5   :  { %1041 = vset.pattern.permute.xlu1 %v1104_v33  ;;  %1044 = vset.pattern.permute.xlu0 %v1105_v35 }
 0x2f6   :  { %479 = vperm.xlu1 %1041, %v172_v29  }
 0x2fa   :  { %1043 = vset.pattern.permute.xlu1 %v1105_v35 }
 0x2fb   :  { %793 = vperm.xlu1 %1043, %v172_v29  }
 0x370   :  { %v324_v39 = vpop.permute.xlu1 %323  ;;  %v637_v47 = vpop.permute.xlu0 %636 }
 0x371   :  { %v326_v49 = vmul.f32 %v324_v39, %v316_v43  ;;  %v639_v52 = vmul.f32 %v637_v47, %v630_v45 }
 0x375   :  { %v480_v48 = vpop.permute.xlu1 %479 }
 0x376   :  { %v482_v50 = vmul.f32 %v480_v48, %v473_v44 }
 0x378   :  { %v483_v53 = vadd.f32 %v482_v50, %v326_v49 }
 0x37a   :  { %v794_v54 = vpop.permute.xlu1 %793  ;;  %v640_v55 = vadd.f32 %v639_v52, %v483_v53 }
 0x37b   :  { %v796_v56 = vmul.f32 %v794_v54, %v787_v51 }
 0x37d   :  { %v797_v57 = vadd.f32 %v796_v56, %v640_v55 }
 0x37f   :  { %798 = vst.msk [vmem:[#allocation2] sm:$0xff] %vm59_vm1, %v797_v57 }
 0x380   :  { %1087 = shalt.err (!%p1084_p4)
}
 0x381   :  { %s1088_s2 = scalar_lea.hbm %s1356_s9, 128 }
 0x382   :  { %p1089_p5 = scmp.ne.s32.totalorder %s1356_s9, %s1088_s2  ;;  %p1092_p6 = scmp.lt.u32.totalorder %s1088_s2, %s1356_s9 }
 0x384   :  { %p1094_p7 = pnand %p1092_p6, %p1089_p5 }
 0x386   :  { %1097 = shalt.err (!%p1094_p7)
}
 0x387   :  { %808 = dma.vmem_to_hbm [thread:$0]  %s806_s5, 128, %s1356_s9, [#allocation3]  }
 0x388   :  { %1098 = dma.done.wait [#allocation3], 128  }
 0x389   :  { %1099 = vsyncadd [#allocation3], 4294967168 }
 0x38a   :  { %812 = vsyncpa [#allocation3], 1 }

</bundles_post_ra>
